<compile_context>
chip_gen: v7x
topology: tpu7x:2x2x1
jax: 0.10.0
libtpu: 0.0.40
codegen_flags: <defaults>
</compile_context>

<pallas_src>
import functools

import jax
import jax.numpy as jnp
from jax.experimental import pallas as pl
from jax.experimental.pallas import tpu as pltpu


_INV_SQRT2 = 0.7071067811865476
_SQRT_2_OVER_PI = 0.7978845608028654

# Regime thresholds (rows).
_LATENCY_B = 64          # <= this: single grid step (per-step overhead dominates)
_PAD_OUT_B = 256         # <= this: lane-pad the output to x128 (unmasked stores)
_MAX_BATCH_TILE = 2048   # cap per-step rows (VMEM stays tiny, steps amortize overhead)


def _erf(x):
    """erf via the Abramowitz & Stegun 7.1.26 rational approximation (|err| <= 1.5e-7).

    Built only from mul/add/exp/where, which are guaranteed to lower under
    Mosaic (lax.erf has no such guarantee inside Pallas TPU kernels).
    """
    a1, a2, a3, a4, a5 = (0.254829592, -0.284496736, 1.421413741,
                          -1.453152027, 1.061405429)
    p = 0.3275911
    ax = jnp.abs(x)
    t = 1.0 / (1.0 + p * ax)
    poly = ((((a5 * t + a4) * t + a3) * t + a2) * t + a1) * t
    y = 1.0 - poly * jnp.exp(-ax * ax)
    return jnp.where(x < 0.0, -y, y)


def _gelu_exact(x):
    # PyTorch F.gelu default (approximate='none'): 0.5*x*(1 + erf(x/sqrt(2))).
    return 0.5 * x * (1.0 + _erf(x * _INV_SQRT2))


def _gelu_tanh(x):
    # tanh approximation: the transcendental goes to the EUP slot instead of a
    # long VALU polynomial — preferred once large batch tiles are VALU-bound.
    return 0.5 * x * (1.0 + jnp.tanh(_SQRT_2_OVER_PI * (x + 0.044715 * x * x * x)))


def basicnn_kernel(x_ref, w1_ref, b1_ref, w2_ref, b2_ref, w3_ref, b3_ref, o_ref,
                   *, gelu_approx):
    act = _gelu_tanh if gelu_approx else _gelu_exact

    # Down-cast (if any) of the streamed f32 x tile happens here, hidden under
    # the MXU/DMA, instead of materializing a casted copy of x in HBM.
    x = x_ref[...].astype(w1_ref.dtype)

    # Matmuls accumulate in f32 on the MXU; bias-add / GELU stay f32 on the VPU
    # (important on v5e, which has no bf16 VPU/EUP).  Note: MXU f32 matmuls at
    # default precision use bf16 passes, so this is "close to", not bit-exact,
    # PyTorch f32.
    h = jnp.dot(x, w1_ref[...], preferred_element_type=jnp.float32)
    h = act(h + b1_ref[...])

    h = jnp.dot(h.astype(w2_ref.dtype), w2_ref[...], preferred_element_type=jnp.float32)
    h = act(h + b2_ref[...])

    o = jnp.dot(h.astype(w3_ref.dtype), w3_ref[...], preferred_element_type=jnp.float32)
    o_ref[...] = (o + b3_ref[...]).astype(o_ref.dtype)


def _round_up(n, m):
    return ((n + m - 1) // m) * m


def _choose_batch_tile(B):
    # x / out live in HBM as f32 -> 8-row sublane granularity on the batch dim.
    if B <= _LATENCY_B:
        # Latency regime: one grid step; splitting only adds ~0.35us/step.
        return _round_up(max(B, 1), 8)
    # Throughput regime: at least 2 "parallel" steps so both v7x TensorCores get
    # work (single-TC v5e/v6e just see slightly smaller tiles), capped so very
    # large B still produces many steps with trivially small VMEM tiles.
    return min(_MAX_BATCH_TILE, _round_up(pl.cdiv(B, 2), 8))


def prepare_params(params, *, compute_dtype=jnp.float32):
    """One-time parameter preparation (hoisted out of the per-call path).

    * Weights are cast to `compute_dtype` (matmul operands); biases stay f32
      (bias-add / GELU always run in f32).
    * A x128 lane-padded copy of the last layer (w3_pad / b3_pad) is kept for
      the small-batch regime, where unmasked full-lane output stores matter
      more than the extra pad bytes.

    Weights stored as [in, out] (PyTorch weight.T); biases as [1, out].
    """
    d_out = params["w3"].shape[1]
    d_out_pad = _round_up(d_out, 128)
    prepped = {
        "w1": params["w1"].astype(compute_dtype),
        "w2": params["w2"].astype(compute_dtype),
        "w3": params["w3"].astype(compute_dtype),
        "b1": params["b1"].astype(jnp.float32),
        "b2": params["b2"].astype(jnp.float32),
        "b3": params["b3"].astype(jnp.float32),
    }
    if d_out_pad != d_out:
        prepped["w3_pad"] = jnp.pad(
            params["w3"], ((0, 0), (0, d_out_pad - d_out))).astype(compute_dtype)
        prepped["b3_pad"] = jnp.pad(
            params["b3"], ((0, 0), (0, d_out_pad - d_out))).astype(jnp.float32)
    else:
        prepped["w3_pad"] = prepped["w3"]
        prepped["b3_pad"] = prepped["b3"]
    return prepped


def basicnn_forward(x, params, *, batch_tile=None, gelu_approx=False):
    """Fused 3-layer MLP forward.  x: [B, d_in] float32.

    `params` should come from `prepare_params` (call it once and reuse); a raw
    param dict is accepted but gets re-prepared on every call (slow path).
    """
    if "w3_pad" not in params:
        params = prepare_params(params)  # slow path — prefer prepare_params() once

    B, d_in = x.shape
    h1 = params["w1"].shape[1]
    h2 = params["w2"].shape[1]
    d_out = params["w3"].shape[1]

    if batch_tile is None:
        batch_tile = _choose_batch_tile(B)
    batch_tile = max(8, _round_up(batch_tile, 8))
    B_pad = _round_up(B, batch_tile)

    # Output layout regime:
    #  * small B  -> lane-padded (x128) output slab: unmasked full-lane stores,
    #    pad bytes negligible at small B.
    #  * large B  -> true d_out: HBM writeback stays ~d_out bytes/row (the kernel
    #    is HBM-bound there; accept vst.msk partial stores).
    pad_output = B <= _PAD_OUT_B
    w3 = params["w3_pad"] if pad_output else params["w3"]
    b3 = params["b3_pad"] if pad_output else params["b3"]
    d_out_k = w3.shape[1]

    # x stays f32 in HBM; any down-cast to the weight dtype happens in-kernel.
    x_p = x if B_pad == B else jnp.pad(x, ((0, B_pad - B), (0, 0)))

    const = lambda i: (0, 0)
    # NOTE(perf): the weight/bias specs are grid-invariant (constant index_map),
    # so the pipeline does not re-fetch them after step 0; the only cost of the
    # default double buffering is a few KB of VMEM at these sizes.  If the
    # hidden sizes grow, single-buffer them (pipeline_mode=pl.Buffered(1)) or
    # stage them once via memory_space=pl.ANY + pltpu.sync_copy and add K-dim
    # tiling with a pl.when-initialized accumulator (v7x has only 64 MiB VMEM).
    kernel = functools.partial(basicnn_kernel, gelu_approx=gelu_approx)

    out = pl.pallas_call(
        kernel,
        out_shape=jax.ShapeDtypeStruct((B_pad, d_out_k), jnp.float32),
        grid_spec=pltpu.PrefetchScalarGridSpec(
            num_scalar_prefetch=0,
            grid=(B_pad // batch_tile,),
            in_specs=[
                pl.BlockSpec((batch_tile, d_in), lambda i: (i, 0)),  # x tile
                pl.BlockSpec((d_in, h1), const),                     # w1
                pl.BlockSpec((1, h1), const),                        # b1
                pl.BlockSpec((h1, h2), const),                       # w2
                pl.BlockSpec((1, h2), const),                        # b2
                pl.BlockSpec((h2, d_out_k), const),                  # w3
                pl.BlockSpec((1, d_out_k), const),                   # b3
            ],
            out_specs=pl.BlockSpec((batch_tile, d_out_k), lambda i: (i, 0)),
        ),
        compiler_params=pltpu.CompilerParams(
            dimension_semantics=("parallel",),
        ),
    )(x_p, params["w1"], params["b1"], params["w2"], params["b2"], w3, b3)

    if B_pad != B or d_out_k != d_out:
        out = out[:B, :d_out]
    return out


def init_params(key, d_in, hidden_sizes, d_out):
    """kaiming_normal_ weights (std = sqrt(2/fan_in)); PyTorch-default uniform
    biases U(-1/sqrt(fan_in), 1/sqrt(fan_in)).  Stored as [in, out] / [1, out]."""
    sizes = [d_in] + list(hidden_sizes) + [d_out]
    params = {}
    for li in range(len(sizes) - 1):
        fan_in, fan_out = sizes[li], sizes[li + 1]
        key, kw, kb = jax.random.split(key, 3)
        w = jax.random.normal(kw, (fan_in, fan_out), jnp.float32) * jnp.sqrt(2.0 / fan_in)
        bound = 1.0 / jnp.sqrt(float(fan_in))
        b = jax.random.uniform(kb, (1, fan_out), jnp.float32, -bound, bound)
        params[f"w{li + 1}"] = w
        params[f"b{li + 1}"] = b
    return params


def reference_forward(x, params, *, approximate=False):
    act = lambda v: jax.nn.gelu(v, approximate=approximate)
    h = act(x @ params["w1"] + params["b1"])
    h = act(h @ params["w2"] + params["b2"])
    return h @ params["w3"] + params["b3"]


if __name__ == "__main__":
    # Shapes consistent with the module: input_sequence_size=16,
    # hidden_layer_units_sizes=[32, 32], output_sequence_size=8, batch=16.
    B, D_IN, H1, H2, D_OUT = 16, 16, 32, 32, 8

    key = jax.random.PRNGKey(0)
    key, kx = jax.random.split(key)
    x = jax.random.normal(kx, (B, D_IN), jnp.float32)
    params = init_params(key, D_IN, [H1, H2], D_OUT)
    ref = reference_forward(x, params)

    # One-time parameter preparation (hoisted out of the per-call path).
    p_f32 = prepare_params(params)
    p_bf16 = prepare_params(params, compute_dtype=jnp.bfloat16)

    # Tolerance note: the kernel and the XLA reference may use different numbers
    # of bf16 passes for f32 MXU matmuls at default precision, so the f32 path
    # is checked at 3e-2 rather than claiming bit-exactness.
    TOL = dict(atol=3e-2, rtol=3e-2)

    # 1) f32 path, latency regime (single grid step, lane-padded output slab).
    out = jax.block_until_ready(basicnn_forward(x, p_f32))
    assert out.shape == (B, D_OUT)
    assert jnp.allclose(out, ref, **TOL), "f32 mismatch vs reference"

    # 2) bf16-operand / f32-accumulate fast path (looser tolerance by design).
    out_bf16 = jax.block_until_ready(basicnn_forward(x, p_bf16))
    assert out_bf16.shape == (B, D_OUT)
    assert jnp.allclose(out_bf16, ref, atol=1e-1, rtol=1e-1), "bf16 mismatch"

    # 3) Ragged batch (pad-and-slice path, B % 8 != 0).
    out_r = jax.block_until_ready(basicnn_forward(x[:10], p_f32))
    assert out_r.shape == (10, D_OUT)
    assert jnp.allclose(out_r, ref[:10], **TOL), "ragged mismatch"

    # 4) Throughput regime: multi-step "parallel" grid, unpadded lane output.
    B2 = 300
    key, kx2 = jax.random.split(key)
    x2 = jax.random.normal(kx2, (B2, D_IN), jnp.float32)
    ref2 = reference_forward(x2, params)
    out2 = jax.block_until_ready(basicnn_forward(x2, p_f32))
    assert out2.shape == (B2, D_OUT)
    assert jnp.allclose(out2, ref2, **TOL), "large-batch mismatch"

    # 5) tanh-GELU option (EUP-friendly), checked against the matching reference.
    out_tanh = jax.block_until_ready(basicnn_forward(x, p_f32, gelu_approx=True))
    assert jnp.allclose(out_tanh, reference_forward(x, params, approximate=True),
                        **TOL), "tanh-gelu mismatch"

    # TODO(synk): fit()/loss()/predict() (Adam training loop, DataLoader) are
    # host-side training utilities, intentionally not ported to Pallas.
    print("KERNEL_OK")
</pallas_src>

<mosaic_0001>
module attributes {stable_mosaic.version = 11 : i64} {
  func.func @basicnn_kernel(%arg0: i32, %arg1: memref<16x16xf32, #tpu.memory_space<vmem>>, %arg2: memref<16x32xf32, #tpu.memory_space<vmem>>, %arg3: memref<1x32xf32, #tpu.memory_space<vmem>>, %arg4: memref<32x32xf32, #tpu.memory_space<vmem>>, %arg5: memref<1x32xf32, #tpu.memory_space<vmem>>, %arg6: memref<32x128xf32, #tpu.memory_space<vmem>>, %arg7: memref<1x128xf32, #tpu.memory_space<vmem>>, %arg8: memref<16x128xf32, #tpu.memory_space<vmem>>) attributes {dimension_semantics = [#tpu.dimension_semantics<parallel>], iteration_bounds = array<i64: 1>, scalar_prefetch = 0 : i64, scratch_operands = 0 : i64, tpu.core_type = #tpu.core_type<tc>, window_params = [{transform_indices = @transform_0, window_bounds = array<i64: 16, 16>}, {pipeline_mode = #tpu.pipeline_mode<synchronous>, transform_indices = @transform_1, window_bounds = array<i64: 16, 32>}, {pipeline_mode = #tpu.pipeline_mode<synchronous>, transform_indices = @transform_2, window_bounds = array<i64: 1, 32>}, {pipeline_mode = #tpu.pipeline_mode<synchronous>, transform_indices = @transform_3, window_bounds = array<i64: 32, 32>}, {pipeline_mode = #tpu.pipeline_mode<synchronous>, transform_indices = @transform_4, window_bounds = array<i64: 1, 32>}, {pipeline_mode = #tpu.pipeline_mode<synchronous>, transform_indices = @transform_5, window_bounds = array<i64: 32, 128>}, {pipeline_mode = #tpu.pipeline_mode<synchronous>, transform_indices = @transform_6, window_bounds = array<i64: 1, 128>}, {transform_indices = @transform_7, window_bounds = array<i64: 16, 128>}]} {
    %c0 = arith.constant 0 : index
    %c0_0 = arith.constant 0 : index
    %0 = vector.load %arg1[%c0, %c0_0] : memref<16x16xf32, #tpu.memory_space<vmem>>, vector<16x16xf32>
    %c0_1 = arith.constant 0 : index
    %c0_2 = arith.constant 0 : index
    %1 = vector.load %arg2[%c0_1, %c0_2] : memref<16x32xf32, #tpu.memory_space<vmem>>, vector<16x32xf32>
    %cst = arith.constant dense<0.000000e+00> : vector<16x32xf32>
    %2 = tpu.matmul %0, %1, %cst {dimension_numbers = #tpu.dot_dimension_numbers<[1], [0], [0], [1], [0, 0, 1, 1], [], []>} : vector<16x16xf32>, vector<16x32xf32>, vector<16x32xf32> -> vector<16x32xf32>
    %c0_3 = arith.constant 0 : index
    %c0_4 = arith.constant 0 : index
    %3 = vector.load %arg3[%c0_3, %c0_4] : memref<1x32xf32, #tpu.memory_space<vmem>>, vector<1x32xf32>
    %4 = vector.broadcast %3 : vector<1x32xf32> to vector<16x32xf32>
    %5 = arith.addf %2, %4 : vector<16x32xf32>
    %cst_5 = arith.constant 5.000000e-01 : f32
    %6 = vector.broadcast %cst_5 : f32 to vector<16x32xf32>
    %7 = arith.mulf %6, %5 : vector<16x32xf32>
    %cst_6 = arith.constant 0.707106769 : f32
    %8 = vector.broadcast %cst_6 : f32 to vector<16x32xf32>
    %9 = arith.mulf %5, %8 : vector<16x32xf32>
    %10 = math.absf %9 : vector<16x32xf32>
    %cst_7 = arith.constant 0.327591091 : f32
    %11 = vector.broadcast %cst_7 : f32 to vector<16x32xf32>
    %12 = arith.mulf %11, %10 : vector<16x32xf32>
    %cst_8 = arith.constant 1.000000e+00 : f32
    %13 = vector.broadcast %cst_8 : f32 to vector<16x32xf32>
    %14 = arith.addf %13, %12 : vector<16x32xf32>
    %cst_9 = arith.constant 1.000000e+00 : f32
    %15 = vector.broadcast %cst_9 : f32 to vector<16x32xf32>
    %16 = arith.divf %15, %14 : vector<16x32xf32>
    %cst_10 = arith.constant 1.06140542 : f32
    %17 = vector.broadcast %cst_10 : f32 to vector<16x32xf32>
    %18 = arith.mulf %17, %16 : vector<16x32xf32>
    %cst_11 = arith.constant -1.45315206 : f32
    %19 = vector.broadcast %cst_11 : f32 to vector<16x32xf32>
    %20 = arith.addf %18, %19 : vector<16x32xf32>
    %21 = arith.mulf %20, %16 : vector<16x32xf32>
    %cst_12 = arith.constant 1.42141378 : f32
    %22 = vector.broadcast %cst_12 : f32 to vector<16x32xf32>
    %23 = arith.addf %21, %22 : vector<16x32xf32>
    %24 = arith.mulf %23, %16 : vector<16x32xf32>
    %cst_13 = arith.constant -0.284496725 : f32
    %25 = vector.broadcast %cst_13 : f32 to vector<16x32xf32>
    %26 = arith.addf %24, %25 : vector<16x32xf32>
    %27 = arith.mulf %26, %16 : vector<16x32xf32>
    %cst_14 = arith.constant 0.254829586 : f32
    %28 = vector.broadcast %cst_14 : f32 to vector<16x32xf32>
    %29 = arith.addf %27, %28 : vector<16x32xf32>
    %30 = arith.mulf %29, %16 : vector<16x32xf32>
    %cst_15 = arith.constant 0.000000e+00 : f32
    %31 = vector.broadcast %cst_15 : f32 to vector<16x32xf32>
    %32 = arith.subf %31, %10 : vector<16x32xf32>
    %33 = arith.mulf %32, %10 : vector<16x32xf32>
    %34 = math.exp %33 : vector<16x32xf32>
    %35 = arith.mulf %30, %34 : vector<16x32xf32>
    %cst_16 = arith.constant 1.000000e+00 : f32
    %36 = vector.broadcast %cst_16 : f32 to vector<16x32xf32>
    %37 = arith.subf %36, %35 : vector<16x32xf32>
    %cst_17 = arith.constant 0.000000e+00 : f32
    %38 = vector.broadcast %cst_17 : f32 to vector<16x32xf32>
    %39 = arith.cmpf olt, %9, %38 : vector<16x32xf32>
    %cst_18 = arith.constant 0.000000e+00 : f32
    %40 = vector.broadcast %cst_18 : f32 to vector<16x32xf32>
    %41 = arith.subf %40, %37 : vector<16x32xf32>
    %42 = arith.select %39, %41, %37 : vector<16x32xi1>, vector<16x32xf32>
    %cst_19 = arith.constant 1.000000e+00 : f32
    %43 = vector.broadcast %cst_19 : f32 to vector<16x32xf32>
    %44 = arith.addf %43, %42 : vector<16x32xf32>
    %45 = arith.mulf %7, %44 : vector<16x32xf32>
    %c0_20 = arith.constant 0 : index
    %c0_21 = arith.constant 0 : index
    %46 = vector.load %arg4[%c0_20, %c0_21] : memref<32x32xf32, #tpu.memory_space<vmem>>, vector<32x32xf32>
    %cst_22 = arith.constant dense<0.000000e+00> : vector<16x32xf32>
    %47 = tpu.matmul %45, %46, %cst_22 {dimension_numbers = #tpu.dot_dimension_numbers<[1], [0], [0], [1], [0, 0, 1, 1], [], []>} : vector<16x32xf32>, vector<32x32xf32>, vector<16x32xf32> -> vector<16x32xf32>
    %c0_23 = arith.constant 0 : index
    %c0_24 = arith.constant 0 : index
    %48 = vector.load %arg5[%c0_23, %c0_24] : memref<1x32xf32, #tpu.memory_space<vmem>>, vector<1x32xf32>
    %49 = vector.broadcast %48 : vector<1x32xf32> to vector<16x32xf32>
    %50 = arith.addf %47, %49 : vector<16x32xf32>
    %cst_25 = arith.constant 5.000000e-01 : f32
    %51 = vector.broadcast %cst_25 : f32 to vector<16x32xf32>
    %52 = arith.mulf %51, %50 : vector<16x32xf32>
    %cst_26 = arith.constant 0.707106769 : f32
    %53 = vector.broadcast %cst_26 : f32 to vector<16x32xf32>
    %54 = arith.mulf %50, %53 : vector<16x32xf32>
    %55 = math.absf %54 : vector<16x32xf32>
    %cst_27 = arith.constant 0.327591091 : f32
    %56 = vector.broadcast %cst_27 : f32 to vector<16x32xf32>
    %57 = arith.mulf %56, %55 : vector<16x32xf32>
    %cst_28 = arith.constant 1.000000e+00 : f32
    %58 = vector.broadcast %cst_28 : f32 to vector<16x32xf32>
    %59 = arith.addf %58, %57 : vector<16x32xf32>
    %cst_29 = arith.constant 1.000000e+00 : f32
    %60 = vector.broadcast %cst_29 : f32 to vector<16x32xf32>
    %61 = arith.divf %60, %59 : vector<16x32xf32>
    %cst_30 = arith.constant 1.06140542 : f32
    %62 = vector.broadcast %cst_30 : f32 to vector<16x32xf32>
    %63 = arith.mulf %62, %61 : vector<16x32xf32>
    %cst_31 = arith.constant -1.45315206 : f32
    %64 = vector.broadcast %cst_31 : f32 to vector<16x32xf32>
    %65 = arith.addf %63, %64 : vector<16x32xf32>
    %66 = arith.mulf %65, %61 : vector<16x32xf32>
    %cst_32 = arith.constant 1.42141378 : f32
    %67 = vector.broadcast %cst_32 : f32 to vector<16x32xf32>
    %68 = arith.addf %66, %67 : vector<16x32xf32>
    %69 = arith.mulf %68, %61 : vector<16x32xf32>
    %cst_33 = arith.constant -0.284496725 : f32
    %70 = vector.broadcast %cst_33 : f32 to vector<16x32xf32>
    %71 = arith.addf %69, %70 : vector<16x32xf32>
    %72 = arith.mulf %71, %61 : vector<16x32xf32>
    %cst_34 = arith.constant 0.254829586 : f32
    %73 = vector.broadcast %cst_34 : f32 to vector<16x32xf32>
    %74 = arith.addf %72, %73 : vector<16x32xf32>
    %75 = arith.mulf %74, %61 : vector<16x32xf32>
    %cst_35 = arith.constant 0.000000e+00 : f32
    %76 = vector.broadcast %cst_35 : f32 to vector<16x32xf32>
    %77 = arith.subf %76, %55 : vector<16x32xf32>
    %78 = arith.mulf %77, %55 : vector<16x32xf32>
    %79 = math.exp %78 : vector<16x32xf32>
    %80 = arith.mulf %75, %79 : vector<16x32xf32>
    %cst_36 = arith.constant 1.000000e+00 : f32
    %81 = vector.broadcast %cst_36 : f32 to vector<16x32xf32>
    %82 = arith.subf %81, %80 : vector<16x32xf32>
    %cst_37 = arith.constant 0.000000e+00 : f32
    %83 = vector.broadcast %cst_37 : f32 to vector<16x32xf32>
    %84 = arith.cmpf olt, %54, %83 : vector<16x32xf32>
    %cst_38 = arith.constant 0.000000e+00 : f32
    %85 = vector.broadcast %cst_38 : f32 to vector<16x32xf32>
    %86 = arith.subf %85, %82 : vector<16x32xf32>
    %87 = arith.select %84, %86, %82 : vector<16x32xi1>, vector<16x32xf32>
    %cst_39 = arith.constant 1.000000e+00 : f32
    %88 = vector.broadcast %cst_39 : f32 to vector<16x32xf32>
    %89 = arith.addf %88, %87 : vector<16x32xf32>
    %90 = arith.mulf %52, %89 : vector<16x32xf32>
    %c0_40 = arith.constant 0 : index
    %c0_41 = arith.constant 0 : index
    %91 = vector.load %arg6[%c0_40, %c0_41] : memref<32x128xf32, #tpu.memory_space<vmem>>, vector<32x128xf32>
    %cst_42 = arith.constant dense<0.000000e+00> : vector<16x128xf32>
    %92 = tpu.matmul %90, %91, %cst_42 {dimension_numbers = #tpu.dot_dimension_numbers<[1], [0], [0], [1], [0, 0, 1, 1], [], []>} : vector<16x32xf32>, vector<32x128xf32>, vector<16x128xf32> -> vector<16x128xf32>
    %c0_43 = arith.constant 0 : index
    %c0_44 = arith.constant 0 : index
    %93 = vector.load %arg7[%c0_43, %c0_44] : memref<1x128xf32, #tpu.memory_space<vmem>>, vector<1x128xf32>
    %94 = vector.broadcast %93 : vector<1x128xf32> to vector<16x128xf32>
    %95 = arith.addf %92, %94 : vector<16x128xf32>
    %c0_45 = arith.constant 0 : index
    %c0_46 = arith.constant 0 : index
    %96 = vector.load %arg8[%c0_45, %c0_46] : memref<16x128xf32, #tpu.memory_space<vmem>>, vector<16x128xf32>
    tpu.vector_store %arg8[%c0_45, %c0_46], %95 {strides = array<i32>} : memref<16x128xf32, #tpu.memory_space<vmem>>, vector<16x128xf32>,
    return
  }
  func.func @transform_0(%arg0: i32) -> (i32, i32) {
    %c0_i32 = arith.constant 0 : i32
    %c0_i32_0 = arith.constant 0 : i32
    return %arg0, %c0_i32 : i32, i32
  }
  func.func @transform_1(%arg0: i32) -> (i32, i32) {
    %c0_i32 = arith.constant 0 : i32
    %c0_i32_0 = arith.constant 0 : i32
    %c0_i32_1 = arith.constant 0 : i32
    return %c0_i32, %c0_i32_0 : i32, i32
  }
  func.func @transform_2(%arg0: i32) -> (i32, i32) {
    %c0_i32 = arith.constant 0 : i32
    %c0_i32_0 = arith.constant 0 : i32
    %c0_i32_1 = arith.constant 0 : i32
    return %c0_i32, %c0_i32_0 : i32, i32
  }
  func.func @transform_3(%arg0: i32) -> (i32, i32) {
    %c0_i32 = arith.constant 0 : i32
    %c0_i32_0 = arith.constant 0 : i32
    %c0_i32_1 = arith.constant 0 : i32
    return %c0_i32, %c0_i32_0 : i32, i32
  }
  func.func @transform_4(%arg0: i32) -> (i32, i32) {
    %c0_i32 = arith.constant 0 : i32
    %c0_i32_0 = arith.constant 0 : i32
    %c0_i32_1 = arith.constant 0 : i32
    return %c0_i32, %c0_i32_0 : i32, i32
  }
  func.func @transform_5(%arg0: i32) -> (i32, i32) {
    %c0_i32 = arith.constant 0 : i32
    %c0_i32_0 = arith.constant 0 : i32
    %c0_i32_1 = arith.constant 0 : i32
    return %c0_i32, %c0_i32_0 : i32, i32
  }
  func.func @transform_6(%arg0: i32) -> (i32, i32) {
    %c0_i32 = arith.constant 0 : i32
    %c0_i32_0 = arith.constant 0 : i32
    %c0_i32_1 = arith.constant 0 : i32
    return %c0_i32, %c0_i32_0 : i32, i32
  }
  func.func @transform_7(%arg0: i32) -> (i32, i32) {
    %c0_i32 = arith.constant 0 : i32
    %c0_i32_0 = arith.constant 0 : i32
    return %arg0, %c0_i32 : i32, i32
  }
}

</mosaic_0001>

<bundles_post_ra>
// kernel: tpu_custom_call.1
= control target key start
LH: loop header
LB: loop body
LE: loop exit
PB: predicated region body
PF: predicated region fallthrough
CT: control target
= control target key end

     0   :  { %12 = vsyncpa [#allocation3], 0  ;;  %s853_s0 = inlined_call_operand.hbm [shape: f32[16,16], index: 0, kind: input, shape index: {}]   ;;  %s854_s1 = inlined_call_operand.hbm [shape: f32[16,32], index: 1, kind: input, shape index: {}]   ;;  %s855_s2 = inlined_call_operand.vmem [shape: f32[1,32], index: 2, kind: input, shape index: {}]   ;;  %s856_s3 = inlined_call_operand.hbm [shape: f32[32,32], index: 3, kind: input, shape index: {}]   ;;  %s857_s4 = inlined_call_operand.vmem [shape: f32[1,32], index: 4, kind: input, shape index: {}]   ;;  %s858_s5 = inlined_call_operand.hbm [shape: f32[32,128], index: 5, kind: input, shape index: {}]   ;;  %s859_s6 = inlined_call_operand.vmem [shape: f32[1,128], index: 6, kind: input, shape index: {}]   ;;  %s860_s7 = inlined_call_operand.hbm [shape: f32[16,128], index: 7, kind: output, shape index: {}]  }
   0x1   :  { %13 = vsyncpa [#allocation6], 0 }
   0x2   :  { %14 = vsyncpa [#allocation9], 0 }
   0x3   :  { %15 = vsyncpa [#allocation4], 0  ;;  %s704_s24 = smov [#allocation5]   ;;  %s705_s26 = smov [#allocation2]  }
   0x4   :  { %s33_s25 = sshll.u32 %s704_s24, 4  ;;  %s21_s27 = sshll.u32 %s705_s26, 4  ;;  %s34_s25 = int_to_ptr.vmem [resolvable:$true] %s33_s25  ;;  %s751_s27 = int_to_ptr.vmem [resolvable:$true] %s21_s27 }
   0x5   :  { %s586_s30 = scalar_lea.hbm %s854_s1, 256 }
   0x6   :  { %p587_p0 = scmp.ne.s32.totalorder %s854_s1, %s586_s30  ;;  %p590_p1 = scmp.lt.u32.totalorder %s586_s30, %s854_s1 }
   0x8   :  { %p592_p2 = pnand %p590_p1, %p587_p0 }
   0xa   :  { %595 = shalt.err (!%p592_p2)
}
   0xb   :  { %s596_s12 = scalar_lea.vmem %s34_s25, 256  ;;  %p601_p4 = scmp.lt.s32.totalorder %s34_s25, %s34_s25 }
   0xc   :  { %p597_p3 = scmp.ne.s32.totalorder %s34_s25, %s596_s12  ;;  %p602_p5 = scmp.lt.s32.totalorder %s596_s12, %s596_s12 }
   0xe   :  { %p603_p6 = por %p602_p5, %p601_p4 }
  0x10   :  { %p604_p7 = pnand %p603_p6, %p597_p3 }
  0x12   :  { %607 = shalt.err (!%p604_p7)
}
  0x13   :  { %s706_s13 = smov 128   ;;  %s707_s14 = smov 8  }
  0x14   :  { %39 = dma.hbm_to_vmem [thread:$0]  %s854_s1, 256, %s34_s25, [#allocation6], %s706_s13, %s706_s13, %s707_s14  }
  0x15   :  { %s608_s19 = scalar_lea.hbm %s853_s0, 256 }
  0x16   :  { %p609_p8 = scmp.ne.s32.totalorder %s853_s0, %s608_s19  ;;  %p612_p9 = scmp.lt.u32.totalorder %s608_s19, %s853_s0 }
  0x18   :  { %p614_p10 = pnand %p612_p9, %p609_p8 }
  0x1a   :  { %617 = shalt.err (!%p614_p10)
}
  0x1b   :  { %s618_s24 = scalar_lea.vmem %s751_s27, 256  ;;  %p623_p12 = scmp.lt.s32.totalorder %s751_s27, %s751_s27 }
  0x1c   :  { %p619_p11 = scmp.ne.s32.totalorder %s751_s27, %s618_s24  ;;  %p624_p13 = scmp.lt.s32.totalorder %s618_s24, %s618_s24 }
  0x1e   :  { %p625_p0 = por %p624_p13, %p623_p12 }
  0x20   :  { %p626_p1 = pnand %p625_p0, %p619_p11 }
  0x22   :  { %629 = shalt.err (!%p626_p1)
}
  0x23   :  { %27 = dma.hbm_to_vmem [thread:$0]  %s853_s0, 256, %s751_s27, [#allocation3], %s706_s13, %s706_s13, %s707_s14  }
  0x24   :  { %s708_s26 = smov [#allocation7]   ;;  %s709_s29 = smov [#allocation8]  }
  0x25   :  { %s47_s28 = sshll.u32 %s708_s26, 4  ;;  %s61_s30 = sshll.u32 %s709_s29, 4  ;;  %s48_s28 = int_to_ptr.vmem [resolvable:$true] %s47_s28  ;;  %s788_s30 = int_to_ptr.vmem [resolvable:$true] %s61_s30 }
  0x26   :  { %s630_s10 = scalar_lea.hbm %s856_s3, 512 }
  0x27   :  { %p631_p2 = scmp.ne.s32.totalorder %s856_s3, %s630_s10  ;;  %p634_p3 = scmp.lt.u32.totalorder %s630_s10, %s856_s3 }
  0x29   :  { %p636_p4 = pnand %p634_p3, %p631_p2 }
  0x2b   :  { %639 = shalt.err (!%p636_p4)
}
  0x2c   :  { %s640_s0 = scalar_lea.vmem %s48_s28, 512  ;;  %p645_p6 = scmp.lt.s32.totalorder %s48_s28, %s48_s28 }
  0x2d   :  { %p641_p5 = scmp.ne.s32.totalorder %s48_s28, %s640_s0  ;;  %p646_p7 = scmp.lt.s32.totalorder %s640_s0, %s640_s0 }
  0x2f   :  { %p647_p8 = por %p646_p7, %p645_p6 }
  0x31   :  { %p648_p9 = pnand %p647_p8, %p641_p5 }
  0x33   :  { %651 = shalt.err (!%p648_p9)
}
  0x34   :  { %53 = dma.hbm_to_vmem [thread:$0]  %s856_s3, 512, %s48_s28, [#allocation6], %s706_s13, %s706_s13, %s707_s14  }
  0x35   :  { %s652_s20 = scalar_lea.hbm %s858_s5, 512 }
  0x36   :  { %p653_p10 = scmp.ne.s32.totalorder %s858_s5, %s652_s20  ;;  %p656_p11 = scmp.lt.u32.totalorder %s652_s20, %s858_s5 }
  0x38   :  { %p658_p12 = pnand %p656_p11, %p653_p10 }
  0x3a   :  { %661 = shalt.err (!%p658_p12)
}
  0x3b   :  { %s662_s1 = scalar_lea.vmem %s788_s30, 512  ;;  %p667_p0 = scmp.lt.s32.totalorder %s788_s30, %s788_s30 }
  0x3c   :  { %p663_p13 = scmp.ne.s32.totalorder %s788_s30, %s662_s1  ;;  %p668_p1 = scmp.lt.s32.totalorder %s662_s1, %s662_s1 }
  0x3e   :  { %p669_p2 = por %p668_p1, %p667_p0 }
  0x40   :  { %p670_p3 = pnand %p669_p2, %p663_p13 }
  0x42   :  { %673 = shalt.err (!%p670_p3)
}
  0x43   :  { %67 = dma.hbm_to_vmem [thread:$0]  %s858_s5, 512, %s788_s30, [#allocation9], %s706_s13, %s706_s13, %s707_s14  }
  0x44   :  { %696 = dma.done.wait [#allocation3], 256  }
  0x45   :  { %697 = vsyncadd [#allocation3], 4294967040 }
  0x46   :  { %698 = dma.done.wait [#allocation6], 768  }
  0x47   :  { %699 = vsyncadd [#allocation6], 4294966528 }
  0x48   :  { %700 = dma.done.wait [#allocation9], 512  }
  0x49   :  { %701 = vsyncadd [#allocation9], 4294966784  ;;  %vm93_vm0 = vcmask 130048   ;;  %v84_v0 = vld [vmem:[#allocation5] sm:$0xff]  ;;  %v85_v1 = vld [vmem:[#allocation5 + $0x8] sm:$0xff]  ;;  %vm240_vm3 = vcmask 261120  }
  0x4a   :  { %v82_v2 = vld [vmem:[#allocation2] sm:$0xff]  ;;  %v543_v3 = vpack.c.bf16 %v85_v1, %v84_v0  ;;  %v83_v4 = vld [vmem:[#allocation2 + $0x8] sm:$0xff]  ;;  %v231_v8 = vld [vmem:[#allocation7 + $0x10] sm:$0xff]  ;;  %s710_s30 = smov [#allocation10]  }
  0x4b   :  { %518 = vmatprep.mubr.msk.f32.mxu0 %vm93_vm0, %v82_v2  ;;  %v229_v5 = vld [vmem:[#allocation7] sm:$0xff]  ;;  %v230_v6 = vld [vmem:[#allocation7 + $0x8] sm:$0xff]  ;;  %v232_v9 = vld [vmem:[#allocation7 + $0x18] sm:$0xff]  ;;  %s475_s8 = sshll.u32 %s710_s30, 4  ;;  %s476_s8 = int_to_ptr.vmem [resolvable:$true] %s475_s8 }
  0x4c   :  { %544 = vmatprep.subr.bf16.mxu0 %v543_v3  ;;  %v547_v7 = vpack.c.bf16 %v230_v6, %v229_v5  ;;  %v551_v10 = vpack.c.bf16 %v232_v9, %v231_v8  ;;  %v489_v11 = vld [vmem:[%s855_s2] ss:$0 sm:$0xff]  ;;  %v378_v5 = vld [vmem:[#allocation8 + $0x10] sm:$0xff]  ;;  %v379_v6 = vld [vmem:[#allocation8 + $0x18] sm:$0xff]  ;;  %s674_s9 = scalar_lea.vmem %s476_s8, 256  ;;  %p679_p5 = scmp.lt.s32.totalorder %s476_s8, %s476_s8 }
  0x4d   :  { %546 = vmatpush3.bf16.msra.mxu0 %v543_v3  ;;  %v376_v2 = vld [vmem:[#allocation8] sm:$0xff]  ;;  %v377_v3 = vld [vmem:[#allocation8 + $0x8] sm:$0xff]  ;;  %p675_p4 = scmp.ne.s32.totalorder %s476_s8, %s674_s9  ;;  %p680_p6 = scmp.lt.s32.totalorder %s674_s9, %s674_s9 }
  0x4e   :  { %548 = vmatprep.subr.bf16.mxu1 %v547_v7  ;;  %v492_v8 = vld [vmem:[%s857_s4] ss:$0 sm:$0xff] }
  0x4f   :  { %550 = vmatpush3.bf16.msra.mxu1 %v547_v7  ;;  %v559_v7 = vpack.c.bf16 %v379_v6, %v378_v5  ;;  %p681_p7 = por %p680_p6, %p679_p5 }
  0x50   :  { %519 = vmatmul.mubr.msk.f32.vlgmr.msra.gmra.mrb[0].mxu0 %vm93_vm0, %v83_v4  ;;  %552 = vmatprep.subr.bf16.mxu1 %v551_v10  ;;  %v555_v4 = vpack.c.bf16 %v377_v3, %v376_v2 }
  0x51   :  { %p682_p8 = pnand %p681_p7, %p675_p4 }
  0x52   :  { %556 = vmatprep.subr.bf16.mxu0 %v555_v4 }
  0x53   :  { %554 = vmatpush3.bf16.msra.mxu1 %v551_v10  ;;  %558 = vmatpush3.bf16.msra.mxu0 %v555_v4 }
  0x54   :  { %560 = vmatprep.subr.bf16.mxu0 %v559_v7 }
  0x57   :  { %562 = vmatpush3.bf16.msra.mxu0 %v559_v7 }
 0x123   :  { %v520_v12 = vpop.f32.mrb[0].mxu0 }
 0x124   :  { %v172_v13 = vadd.f32 %v520_v12, %v489_v11  ;;  %v166_v14 = vpop.f32.mrb[1].mxu0 }
 0x125   :  { %v167_v15 = vadd.f32 %v489_v11, %v166_v14 }
 0x126   :  { %v178_v16 = vmul.f32 0.70710677, %v172_v13  ;;  %v176_v63 = vmul.f32 0.5, %v172_v13 }
 0x127   :  { %v177_v17 = vmul.f32 0.70710677, %v167_v15  ;;  %v175_v61 = vmul.f32 0.5, %v167_v15 }
 0x128   :  { %v180_v18 = vand.u32 2147483647, %v178_v16  ;;  %vm220_vm1 = vcmp.lt.f32.partialorder %v178_v16, 0.0 }
 0x129   :  { %v179_v19 = vand.u32 2147483647, %v177_v17  ;;  %vm219_vm2 = vcmp.lt.f32.partialorder %v177_v17, 0.0 }
 0x12a   :  { %v182_v20 = vmul.f32 0.3275911, %v180_v18  ;;  %v208_v24 = vsub.f32 0.0, %v180_v18 }
 0x12b   :  { %v181_v21 = vmul.f32 0.3275911, %v179_v19  ;;  %v207_v25 = vsub.f32 0.0, %v179_v19 }
 0x12c   :  { %v184_v22 = vadd.f32 1.0, %v182_v20  ;;  %v210_v27 = vmul.f32 %v208_v24, %v180_v18 }
 0x12d   :  { %v183_v23 = vadd.f32 1.0, %v181_v21  ;;  %v209_v30 = vmul.f32 %v207_v25, %v179_v19 }
 0x12e   :  { %570 = vrcp.f32 %v184_v22  ;;  %v213_v33 = vmul.f32 1.442695, %v210_v27 }
 0x12f   :  { %572 = vrcp.f32 %v183_v23  ;;  %v211_v36 = vmul.f32 1.442695, %v209_v30 }
 0x130   :  { %574 = vpow2.f32 %v213_v33 }
 0x131   :  { %576 = vpow2.f32 %v211_v36 }
 0x138   :  { %v571_v26 = vpop.eup %570 }
 0x139   :  { %v573_v28 = vpop.eup %572  ;;  %v190_v29 = vmul.f32 1.0614054, %v571_v26 }
 0x13a   :  { %v189_v31 = vmul.f32 1.0614054, %v573_v28  ;;  %v575_v49 = vpop.eup %574 }
 0x13b   :  { %v192_v32 = vadd.f32 -1.4531521, %v190_v29  ;;  %v577_v51 = vpop.eup %576 }
 0x13c   :  { %v191_v34 = vadd.f32 -1.4531521, %v189_v31 }
 0x13d   :  { %v194_v35 = vmul.f32 %v571_v26, %v192_v32 }
 0x13e   :  { %v193_v37 = vmul.f32 %v573_v28, %v191_v34 }
 0x13f   :  { %v196_v38 = vadd.f32 1.4214138, %v194_v35 }
 0x140   :  { %v195_v39 = vadd.f32 1.4214138, %v193_v37 }
 0x141   :  { %v198_v40 = vmul.f32 %v571_v26, %v196_v38 }
 0x142   :  { %v197_v41 = vmul.f32 %v573_v28, %v195_v39 }
 0x143   :  { %v200_v42 = vadd.f32 -0.28449672, %v198_v40 }
 0x144   :  { %v199_v43 = vadd.f32 -0.28449672, %v197_v41 }
 0x145   :  { %v202_v44 = vmul.f32 %v571_v26, %v200_v42 }
 0x146   :  { %v201_v45 = vmul.f32 %v573_v28, %v199_v43 }
 0x147   :  { %v204_v46 = vadd.f32 0.2548296, %v202_v44 }
 0x148   :  { %v203_v47 = vadd.f32 0.2548296, %v201_v45 }
 0x149   :  { %v206_v48 = vmul.f32 %v571_v26, %v204_v46 }
 0x14a   :  { %v205_v50 = vmul.f32 %v573_v28, %v203_v47 }
 0x14b   :  { %v216_v52 = vmul.f32 %v575_v49, %v206_v48 }
 0x14c   :  { %v215_v53 = vmul.f32 %v577_v51, %v205_v50 }
 0x14d   :  { %v218_v54 = vsub.f32 1.0, %v216_v52 }
 0x14e   :  { %v217_v55 = vsub.f32 1.0, %v215_v53 }
 0x14f   :  { %v222_v56 = vsub.f32 0.0, %v218_v54 }
 0x150   :  { %v221_v57 = vsub.f32 0.0, %v217_v55 }
 0x151   :  { %v224_v58 = vsel %vm220_vm1, %v222_v56, %v218_v54 }
 0x152   :  { %v226_v59 = vadd.f32 1.0, %v224_v58  ;;  %v223_v60 = vsel %vm219_vm2, %v221_v57, %v217_v55 }
 0x153   :  { %v225_v62 = vadd.f32 1.0, %v223_v60 }
 0x154   :  { %v228_v1 = vmul.f32 %v226_v59, %v176_v63  ;;  %v495_v63 = vld [vmem:[%s859_s6] ss:$0 sm:$0xff] }
 0x155   :  { %v227_v0 = vmul.f32 %v225_v62, %v175_v61 }
 0x157   :  { %529 = vmatprep.mubr.msk.f32.mxu1 %vm240_vm3, %v227_v0 }
 0x158   :  { %530 = vmatmul.mubr.msk.f32.vlgmr.msra.gmra.mrb[0].mxu1 %vm240_vm3, %v228_v1 }
 0x22b   :  { %v531_v9 = vpop.f32.mrb[0].mxu1 }
 0x22c   :  { %v319_v10 = vadd.f32 %v531_v9, %v492_v8  ;;  %v313_v11 = vpop.f32.mrb[1].mxu1 }
 0x22d   :  { %v314_v12 = vadd.f32 %v492_v8, %v313_v11 }
 0x22e   :  { %v325_v13 = vmul.f32 0.70710677, %v319_v10  ;;  %v323_v60 = vmul.f32 0.5, %v319_v10 }
 0x22f   :  { %v324_v14 = vmul.f32 0.70710677, %v314_v12  ;;  %v322_v58 = vmul.f32 0.5, %v314_v12 }
 0x230   :  { %v327_v15 = vand.u32 2147483647, %v325_v13  ;;  %vm367_vm4 = vcmp.lt.f32.partialorder %v325_v13, 0.0 }
 0x231   :  { %v326_v16 = vand.u32 2147483647, %v324_v14  ;;  %vm366_vm5 = vcmp.lt.f32.partialorder %v324_v14, 0.0 }
 0x232   :  { %v329_v17 = vmul.f32 0.3275911, %v327_v15  ;;  %v355_v21 = vsub.f32 0.0, %v327_v15 }
 0x233   :  { %v328_v18 = vmul.f32 0.3275911, %v326_v16  ;;  %v354_v22 = vsub.f32 0.0, %v326_v16 }
 0x234   :  { %v331_v19 = vadd.f32 1.0, %v329_v17  ;;  %v357_v24 = vmul.f32 %v355_v21, %v327_v15 }
 0x235   :  { %v330_v20 = vadd.f32 1.0, %v328_v18  ;;  %v356_v27 = vmul.f32 %v354_v22, %v326_v16 }
 0x236   :  { %578 = vrcp.f32 %v331_v19  ;;  %v360_v30 = vmul.f32 1.442695, %v357_v24 }
 0x237   :  { %580 = vrcp.f32 %v330_v20  ;;  %v358_v33 = vmul.f32 1.442695, %v356_v27 }
 0x238   :  { %582 = vpow2.f32 %v360_v30 }
 0x239   :  { %584 = vpow2.f32 %v358_v33 }
 0x240   :  { %v579_v23 = vpop.eup %578 }
 0x241   :  { %v581_v25 = vpop.eup %580  ;;  %v337_v26 = vmul.f32 1.0614054, %v579_v23 }
 0x242   :  { %v336_v28 = vmul.f32 1.0614054, %v581_v25  ;;  %v583_v46 = vpop.eup %582 }
 0x243   :  { %v339_v29 = vadd.f32 -1.4531521, %v337_v26  ;;  %v585_v48 = vpop.eup %584 }
 0x244   :  { %v338_v31 = vadd.f32 -1.4531521, %v336_v28 }
 0x245   :  { %v341_v32 = vmul.f32 %v579_v23, %v339_v29 }
 0x246   :  { %v340_v34 = vmul.f32 %v581_v25, %v338_v31 }
 0x247   :  { %v343_v35 = vadd.f32 1.4214138, %v341_v32 }
 0x248   :  { %v342_v36 = vadd.f32 1.4214138, %v340_v34 }
 0x249   :  { %v345_v37 = vmul.f32 %v579_v23, %v343_v35 }
 0x24a   :  { %v344_v38 = vmul.f32 %v581_v25, %v342_v36 }
 0x24b   :  { %v347_v39 = vadd.f32 -0.28449672, %v345_v37 }
 0x24c   :  { %v346_v40 = vadd.f32 -0.28449672, %v344_v38 }
 0x24d   :  { %v349_v41 = vmul.f32 %v579_v23, %v347_v39 }
 0x24e   :  { %v348_v42 = vmul.f32 %v581_v25, %v346_v40 }
 0x24f   :  { %v351_v43 = vadd.f32 0.2548296, %v349_v41 }
 0x250   :  { %v350_v44 = vadd.f32 0.2548296, %v348_v42 }
 0x251   :  { %v353_v45 = vmul.f32 %v579_v23, %v351_v43 }
 0x252   :  { %v352_v47 = vmul.f32 %v581_v25, %v350_v44 }
 0x253   :  { %v363_v49 = vmul.f32 %v583_v46, %v353_v45 }
 0x254   :  { %v362_v50 = vmul.f32 %v585_v48, %v352_v47 }
 0x255   :  { %v365_v51 = vsub.f32 1.0, %v363_v49 }
 0x256   :  { %v364_v52 = vsub.f32 1.0, %v362_v50 }
 0x257   :  { %v369_v53 = vsub.f32 0.0, %v365_v51 }
 0x258   :  { %v368_v54 = vsub.f32 0.0, %v364_v52 }
 0x259   :  { %v371_v55 = vsel %vm367_vm4, %v369_v53, %v365_v51 }
 0x25a   :  { %v373_v56 = vadd.f32 1.0, %v371_v55  ;;  %v370_v57 = vsel %vm366_vm5, %v368_v54, %v364_v52 }
 0x25b   :  { %v372_v59 = vadd.f32 1.0, %v370_v57 }
 0x25c   :  { %v375_v62 = vmul.f32 %v373_v56, %v323_v60 }
 0x25d   :  { %v374_v61 = vmul.f32 %v372_v59, %v322_v58 }
 0x25f   :  { %540 = vmatprep.mubr.msk.f32.mxu0 %vm240_vm3, %v374_v61 }
 0x260   :  { %541 = vmatmul.mubr.msk.f32.vlgmr.msra.gmra.mrb[2].mxu0 %vm240_vm3, %v375_v62 }
 0x333   :  { %v542_v0 = vpop.f32.mrb[2].mxu0 }
 0x334   :  { %v465_v1 = vadd.f32 %v542_v0, %v495_v63  ;;  %v459_v2 = vpop.f32.mrb[3].mxu0 }
 0x335   :  { %v460_v3 = vadd.f32 %v495_v63, %v459_v2 }
 0x336   :  { %469 = vst [vmem:[#allocation10 + $0x8] sm:$0xff] %v465_v1 }
 0x337   :  { %468 = vst [vmem:[#allocation10] sm:$0xff] %v460_v3 }
 0x338   :  { %685 = shalt.err (!%p682_p8)
}
 0x339   :  { %s686_s6 = scalar_lea.hbm %s860_s7, 256 }
 0x33a   :  { %p687_p9 = scmp.ne.s32.totalorder %s860_s7, %s686_s6  ;;  %p690_p10 = scmp.lt.u32.totalorder %s686_s6, %s860_s7 }
 0x33c   :  { %p692_p11 = pnand %p690_p10, %p687_p9 }
 0x33e   :  { %695 = shalt.err (!%p692_p11)
}
 0x33f   :  { %481 = dma.vmem_to_hbm [thread:$0]  %s476_s8, 256, %s860_s7, [#allocation4], %s706_s13, %s706_s13, %s707_s14  }
 0x340   :  { %702 = dma.done.wait [#allocation4], 256  }
 0x341   :  { %703 = vsyncadd [#allocation4], 4294967040 }
 0x342   :  { %485 = vsyncpa [#allocation3], 1 }
 0x343   :  { %486 = vsyncpa [#allocation6], 1 }
 0x344   :  { %487 = vsyncpa [#allocation9], 1 }
 0x345   :  { %488 = vsyncpa [#allocation4], 1 }

</bundles_post_ra>
